<compile_context>
chip_gen: v5e
topology: v5e:2x2
jax: 0.10.0
libtpu: 0.0.40
codegen_flags: <defaults>
</compile_context>

<pallas_src>
from typing import Dict, List, Optional, Tuple

import numpy as np

import jax
import jax.numpy as jnp
from jax.experimental import pallas as pl
from jax.experimental.pallas import tpu as pltpu


# ----------------------------------------------------------------------------
# VMEM budgeting helpers
# ----------------------------------------------------------------------------

_LANE_TARGET = 16 * 1024  # target lanes per block along the flattened H*W axis


def _vmem_capacity_bytes() -> int:
    """Physical per-core VMEM; conservative (v7x = 64 MiB) if query fails."""
    try:
        cap = int(pltpu.get_tpu_info().vmem_capacity_bytes)
        if cap > 0:
            return max(32 << 20, min(cap, 256 << 20))
    except Exception:
        pass
    return 64 << 20


def _pick_norm_blocks(rows: int, hw: int, in_item: int, out_item: int,
                      resident_budget: int) -> Tuple[int, int]:
    """(row_block, lane_block) for the normalize kernel.

    Accounts for double-buffered input AND output (2*(in+out) bytes/elem).
    Row block is a multiple of 8 (or == rows); lane block is a multiple of
    128 (or == hw).
    """
    per_elem = 2 * (in_item + out_item)
    budget_elems = max(128, resident_budget // per_elem)

    # Lane block.
    if hw <= _LANE_TARGET:
        bl = hw
    else:
        bl = max(128, (min(hw, _LANE_TARGET) // 128) * 128)
    # Make sure an 8-row block fits the budget by shrinking the lane block.
    if 8 * bl > budget_elems and bl > 128:
        bl = max(128, ((budget_elems // 8) // 128) * 128)

    # Row block.
    br = max(1, budget_elems // bl)
    if br >= rows:
        br = rows
    else:
        br = max(8, (br // 8) * 8)

    # Give megacore (v7x: 2 TCs) at least 2 blocks when there is enough work.
    if pl.cdiv(rows, br) * pl.cdiv(hw, bl) < 2 and rows >= 16:
        br = max(8, (((rows + 1) // 2) // 8) * 8)
    return br, bl


def _pick_fused_blocks(nc: int, h: int, w: int, h_out: int, w_out: int,
                       in_item: int, out_item: int,
                       resident_budget: int) -> Tuple[int, int, int]:
    """(bc, bh, resident_bytes) for the fused normalize+resize kernel."""

    def resident(bc: int, bh: int) -> int:
        img = 2 * bc * bh * w * in_item            # input block, dbl-buffered
        norm = 2 * bc * bh * w * out_item          # normalized output
        res = 2 * bc * h_out * w_out * out_item    # resized output buffers
        acc = 4 * bc * h_out * w_out               # f32 accumulator scratch
        mats = 2 * 2 * (h_out * bh + w * w_out)    # bf16 interp matrices
        interm = 4 * bc * bh * (w + 2 * w_out) + 4 * bc * h_out * w_out
        return img + norm + res + acc + mats + interm

    # H-block candidates: full H first (no ragged masking), then mults of 128.
    cands = [h]
    c = (h // 128) * 128
    while c >= 128:
        if c not in cands:
            cands.append(c)
        c = ((c // 2) // 128) * 128
    if h > 128 and 128 not in cands:
        cands.append(128)

    bh = None
    for c in cands:
        if resident(1, c) <= resident_budget:
            bh = c
            break
    if bh is None:
        bh = cands[-1]  # smallest legal block; explicit vmem_limit covers it

    # Grow bc, but keep >= 2 blocks on the parallel (nc) axis for megacore.
    bc_cap = nc if nc < 2 else (nc + 1) // 2
    bc = 1
    while bc < bc_cap and resident(bc + 1, bh) <= resident_budget:
        bc += 1
    return bc, bh, resident(bc, bh)


def _vmem_limit(resident_bytes: int, cap: int) -> int:
    return min(int(cap * 0.9), max(16 << 20, resident_bytes + (2 << 20)))


# ----------------------------------------------------------------------------
# Pallas kernels
# ----------------------------------------------------------------------------

def _normalize_fma_kernel(img_ref, scale_ref, bias_ref, out_ref):
    """out = img * inv_std[row] + (-mean/std)[row] on a lane-dense tile."""
    x = img_ref[...].astype(jnp.float32)
    out_ref[...] = (x * scale_ref[...] + bias_ref[...]).astype(out_ref.dtype)


def _make_normalize_resize_kernel(h_total: int):
    """Fused normalize + separable bilinear resize with H-block accumulation.

    img_ref:     (bc, bh, W)          raw image block
    scale/bias:  (bc, 1, 1)           per-(image,channel) inv_std / -mean*inv_std
    awt_ref:     (W, W_out)  bf16     W-interp matrix (transposed)
    ah_ref:      (H_out, bh) bf16     H-interp matrix block
    norm_ref:    (bc, bh, W)          normalized output (real forward() output)
    resized_ref: (bc, H_out, W_out)   resized output (discarded by reference)
    acc_ref:     (H_out, bc*W_out)    f32 accumulator over H blocks
    """

    def kernel(img_ref, scale_ref, bias_ref, awt_ref, ah_ref,
               norm_ref, resized_ref, acc_ref):
        j = pl.program_id(1)
        bc, bh, w = img_ref.shape
        w_out = awt_ref.shape[1]
        h_out = ah_ref.shape[0]
        cdt = awt_ref.dtype  # MXU compute dtype (bf16)

        x = img_ref[...].astype(jnp.float32)
        xn = x * scale_ref[...] + bias_ref[...]
        norm_ref[...] = xn.astype(norm_ref.dtype)

        # W-resize for all bc*bh rows in ONE matmul: (bc*bh, W) @ (W, W_out).
        t = jnp.dot(xn.reshape(bc * bh, w).astype(cdt), awt_ref[...],
                    preferred_element_type=jnp.float32)
        t3 = t.reshape(bc, bh, w_out)

        # Ragged last H block: zero contributions from padded rows.
        if h_total % bh != 0:
            r = jax.lax.broadcasted_iota(jnp.int32, (1, bh, 1), 1)
            t3 = jnp.where(r + j * bh < h_total, t3, 0.0)

        # Batched H-resize: ONE matmul (H_out, bh) @ (bh, bc*W_out).
        t_t = jnp.transpose(t3, (1, 0, 2)).reshape(bh, bc * w_out)
        part = jnp.dot(ah_ref[...], t_t.astype(cdt),
                       preferred_element_type=jnp.float32)

        @pl.when(j == 0)
        def _():
            acc_ref[...] = jnp.zeros_like(acc_ref)

        acc_ref[...] += part

        @pl.when(j == pl.num_programs(1) - 1)
        def _():
            y = acc_ref[...].reshape(h_out, bc, w_out)
            y = jnp.transpose(y, (1, 0, 2))          # (bc, H_out, W_out)
            resized_ref[...] = y.astype(resized_ref.dtype)

    return kernel


# ----------------------------------------------------------------------------
# Helpers
# ----------------------------------------------------------------------------

def _interp_matrix(out_size: int, in_size: int) -> np.ndarray:
    """Bilinear (align_corners=False) interpolation matrix, shape (out, in)."""
    i = np.arange(out_size, dtype=np.float64)
    src = (i + 0.5) * (float(in_size) / float(out_size)) - 0.5
    src = np.clip(src, 0.0, float(in_size - 1))
    lo = np.floor(src).astype(np.int64)
    hi = np.minimum(lo + 1, in_size - 1)
    frac = (src - lo).astype(np.float32)
    mat = np.zeros((out_size, in_size), dtype=np.float32)
    rows = np.arange(out_size)
    mat[rows, lo] += 1.0 - frac
    mat[rows, hi] += frac
    return mat


def _per_row_scale_bias(n: int, image_mean, image_std):
    inv_std = 1.0 / jnp.asarray(image_std, jnp.float32)
    bias = -jnp.asarray(image_mean, jnp.float32) * inv_std
    return jnp.tile(inv_std, n), jnp.tile(bias, n)


# ----------------------------------------------------------------------------
# pallas_call wrappers
# ----------------------------------------------------------------------------

def normalize_images(images_nchw: jnp.ndarray,
                     image_mean: List[float],
                     image_std: List[float]) -> jnp.ndarray:
    """(img - mean[c]) / std[c] as one batched, lane-dense FMA kernel."""
    n, c, h, w = images_nchw.shape
    rows, hw = n * c, h * w
    x2d = images_nchw.reshape(rows, hw)

    scale_rows, bias_rows = _per_row_scale_bias(n, image_mean, image_std)
    scale_rows = scale_rows.reshape(rows, 1)
    bias_rows = bias_rows.reshape(rows, 1)

    itemsize = jnp.dtype(images_nchw.dtype).itemsize
    cap = _vmem_capacity_bytes()
    br, bl = _pick_norm_blocks(rows, hw, itemsize, itemsize,
                               resident_budget=int(cap * 0.40))
    grid = (pl.cdiv(rows, br), pl.cdiv(hw, bl))

    resident = 2 * br * bl * (itemsize + itemsize) + 4 * 2 * br * 4

    out = pl.pallas_call(
        _normalize_fma_kernel,
        out_shape=jax.ShapeDtypeStruct((rows, hw), images_nchw.dtype),
        grid=grid,
        in_specs=[
            pl.BlockSpec((br, bl), lambda i, j: (i, j)),
            pl.BlockSpec((br, 1), lambda i, j: (i, 0)),
            pl.BlockSpec((br, 1), lambda i, j: (i, 0)),
        ],
        out_specs=pl.BlockSpec((br, bl), lambda i, j: (i, j)),
        compiler_params=pltpu.CompilerParams(
            dimension_semantics=("parallel", "parallel"),
            vmem_limit_bytes=_vmem_limit(resident, cap)),
    )(x2d, scale_rows, bias_rows)
    return out.reshape(n, c, h, w)


def normalize_and_resize(images_nchw: jnp.ndarray,
                         image_mean: List[float],
                         image_std: List[float],
                         image_size: Tuple[int, int],
                         compute_dtype=jnp.bfloat16):
    """Fused normalize + bilinear resize; returns (normalized, resized)."""
    n, c, h, w = images_nchw.shape
    h_out, w_out = image_size
    nc = n * c
    x3d = images_nchw.reshape(nc, h, w)

    scale_rows, bias_rows = _per_row_scale_bias(n, image_mean, image_std)
    scale_rows = scale_rows.reshape(nc, 1, 1)
    bias_rows = bias_rows.reshape(nc, 1, 1)

    ah = jnp.asarray(_interp_matrix(h_out, h), dtype=compute_dtype)     # (H_out, H)
    awt = jnp.asarray(_interp_matrix(w_out, w).T, dtype=compute_dtype)  # (W, W_out)

    itemsize = jnp.dtype(images_nchw.dtype).itemsize
    cap = _vmem_capacity_bytes()
    bc, bh, resident = _pick_fused_blocks(nc, h, w, h_out, w_out,
                                          itemsize, itemsize,
                                          resident_budget=int(cap * 0.40))
    grid = (pl.cdiv(nc, bc), pl.cdiv(h, bh))

    kernel = _make_normalize_resize_kernel(h)

    norm, resized = pl.pallas_call(
        kernel,
        out_shape=(jax.ShapeDtypeStruct((nc, h, w), images_nchw.dtype),
                   jax.ShapeDtypeStruct((nc, h_out, w_out), images_nchw.dtype)),
        grid=grid,
        in_specs=[
            pl.BlockSpec((bc, bh, w), lambda i, j: (i, j, 0)),
            pl.BlockSpec((bc, 1, 1), lambda i, j: (i, 0, 0)),
            pl.BlockSpec((bc, 1, 1), lambda i, j: (i, 0, 0)),
            pl.BlockSpec((w, w_out), lambda i, j: (0, 0)),
            pl.BlockSpec((h_out, bh), lambda i, j: (0, j)),
        ],
        out_specs=(pl.BlockSpec((bc, bh, w), lambda i, j: (i, j, 0)),
                   pl.BlockSpec((bc, h_out, w_out), lambda i, j: (i, 0, 0))),
        scratch_shapes=[pltpu.VMEM((h_out, bc * w_out), jnp.float32)],
        compiler_params=pltpu.CompilerParams(
            dimension_semantics=("parallel", "arbitrary"),
            vmem_limit_bytes=_vmem_limit(resident, cap)),
    )(x3d, scale_rows, bias_rows, awt, ah)

    return (norm.reshape(n, c, h, w),
            resized.reshape(n, c, h_out, w_out))


def resize_boxes(boxes: jnp.ndarray,
                 original_size: Tuple[int, int],
                 new_size: Tuple[int, int]) -> jnp.ndarray:
    """Tiny (M,4) scaling — plain jnp (a Pallas launch here is pure overhead)."""
    (h, w), (new_h, new_w) = original_size, new_size
    ratio_h = jnp.float32(new_h) / jnp.float32(h)
    ratio_w = jnp.float32(new_w) / jnp.float32(w)
    scale = jnp.stack([ratio_w, ratio_h, ratio_w, ratio_h]).astype(boxes.dtype)
    return boxes * scale


# ----------------------------------------------------------------------------
# Module-equivalent wrapper (mirrors GeneralizedRCNNTransform.forward)
# ----------------------------------------------------------------------------

class GeneralizedRCNNTransform:
    """forward(): normalize all images (batched), rescale boxes to image_size.

    The reference also computes a bilinear resize and discards it (only boxes
    use image_size); set compute_resized=True to reproduce that dead compute
    with the fused Pallas kernel. Default skips it (identical outputs).
    """

    def __init__(self, image_size: Tuple[int, int],
                 image_mean: List[float], image_std: List[float],
                 compute_resized: bool = False):
        self.image_size = tuple(image_size)
        self.image_mean = list(image_mean)
        self.image_std = list(image_std)
        self.compute_resized = compute_resized
        if compute_resized:
            self._image_fn = jax.jit(
                lambda x: normalize_and_resize(x, self.image_mean,
                                               self.image_std, self.image_size))
        else:
            self._image_fn = jax.jit(
                lambda x: normalize_images(x, self.image_mean, self.image_std))

    def __call__(self,
                 images: List[jnp.ndarray],
                 targets: Optional[List[Dict[str, jnp.ndarray]]] = None):
        for img in images:
            if not jnp.issubdtype(img.dtype, jnp.floating):
                raise TypeError(
                    f"Expected input images to be of floating type (in range "
                    f"[0, 1]), but found type {img.dtype} instead")

        # Reference torch.cat requires identical (C,H,W) -> stack the batch.
        batched = jnp.stack(images, axis=0)

        if self.compute_resized:
            normalized, _resized = self._image_fn(batched)  # _resized discarded
        else:
            normalized = self._image_fn(batched)

        out_targets = None
        if targets is not None:
            out_targets = []
            for i, t in enumerate(targets):
                t = {k: v for k, v in t.items()}
                h, w = images[i].shape[-2:]
                t["boxes"] = resize_boxes(t["boxes"], (h, w), self.image_size)
                out_targets.append(t)

        # Reference: images[i] = image.unsqueeze(0) (normalized, NOT resized)
        return normalized, out_targets


# ----------------------------------------------------------------------------
# Main
# ----------------------------------------------------------------------------

if __name__ == "__main__":
    key = jax.random.PRNGKey(0)
    N, C, H, W = 2, 3, 16, 16
    IMAGE_SIZE = (32, 32)
    IMAGE_MEAN = [0.485, 0.456, 0.406]
    IMAGE_STD = [0.229, 0.224, 0.225]

    k_img, k_box = jax.random.split(key)
    img_keys = jax.random.split(k_img, N)
    box_keys = jax.random.split(k_box, N)

    images = [jax.random.uniform(k, (C, H, W), dtype=jnp.float32)
              for k in img_keys]

    targets = []
    for i in range(N):
        raw = jax.random.uniform(box_keys[i], (3, 4), dtype=jnp.float32)
        raw = raw * jnp.array([W, H, W, H], dtype=jnp.float32)
        lo = jnp.minimum(raw[:, :2], raw[:, 2:])
        hi = jnp.maximum(raw[:, :2], raw[:, 2:])
        boxes = jnp.concatenate([lo, hi], axis=1)  # (xmin, ymin, xmax, ymax)
        targets.append({"boxes": boxes,
                        "labels": jnp.arange(3, dtype=jnp.int32)})

    # --- default (fast) path: batched normalize, boxes scaled, resize skipped ---
    transform = GeneralizedRCNNTransform(IMAGE_SIZE, IMAGE_MEAN, IMAGE_STD)
    batched_images, out_targets = transform(images, targets)
    batched_images = jax.block_until_ready(batched_images)
    for t in out_targets:
        jax.block_until_ready(t["boxes"])

    # --- plain-JAX reference checks ---
    mean = jnp.array(IMAGE_MEAN, jnp.float32)[:, None, None]
    std = jnp.array(IMAGE_STD, jnp.float32)[:, None, None]
    ref_imgs = jnp.stack([(im - mean) / std for im in images], axis=0)
    assert batched_images.shape == (N, C, H, W)
    assert jnp.allclose(batched_images, ref_imgs, atol=1e-5, rtol=1e-5)

    rh = jnp.float32(IMAGE_SIZE[0]) / jnp.float32(H)
    rw = jnp.float32(IMAGE_SIZE[1]) / jnp.float32(W)
    scale_ref = jnp.array([rw, rh, rw, rh], dtype=jnp.float32)
    for t_in, t_out in zip(targets, out_targets):
        assert jnp.allclose(t_out["boxes"], t_in["boxes"] * scale_ref,
                            atol=1e-5, rtol=1e-5)
        assert jnp.array_equal(t_out["labels"], t_in["labels"])

    # --- fused normalize+resize kernel (the reference's dead compute) ---
    stacked = jnp.stack(images, axis=0)
    fused = jax.jit(lambda x: normalize_and_resize(x, IMAGE_MEAN, IMAGE_STD,
                                                   IMAGE_SIZE))
    norm2, resized = fused(stacked)
    norm2 = jax.block_until_ready(norm2)
    resized = jax.block_until_ready(resized)

    assert jnp.allclose(norm2, ref_imgs, atol=1e-5, rtol=1e-5)

    ah_f32 = jnp.asarray(_interp_matrix(IMAGE_SIZE[0], H))
    awt_f32 = jnp.asarray(_interp_matrix(IMAGE_SIZE[1], W).T)
    ref_resized = jnp.einsum("oh,nchw,wp->ncop", ah_f32, ref_imgs, awt_f32)
    # bf16 MXU compute -> loose tolerance (this output is discarded by forward()).
    assert jnp.allclose(resized, ref_resized, atol=6e-2, rtol=6e-2)

    print("KERNEL_OK")
</pallas_src>

<mosaic_0001>
module attributes {stable_mosaic.version = 11 : i64} {
  func.func @_normalize_fma_kernel(%arg0: i32, %arg1: i32, %arg2: memref<6x256xf32, #tpu.memory_space<vmem>>, %arg3: memref<6x1xf32, #tpu.memory_space<vmem>>, %arg4: memref<6x1xf32, #tpu.memory_space<vmem>>, %arg5: memref<6x256xf32, #tpu.memory_space<vmem>>) attributes {dimension_semantics = [#tpu.dimension_semantics<parallel>, #tpu.dimension_semantics<parallel>], iteration_bounds = array<i64: 1, 1>, scalar_prefetch = 0 : i64, scratch_operands = 0 : i64, tpu.core_type = #tpu.core_type<tc>, window_params = [{transform_indices = @transform_0, window_bounds = array<i64: 6, 256>}, {transform_indices = @transform_1, window_bounds = array<i64: 6, 1>}, {transform_indices = @transform_2, window_bounds = array<i64: 6, 1>}, {transform_indices = @transform_3, window_bounds = array<i64: 6, 256>}]} {
    %c0 = arith.constant 0 : index
    %c0_0 = arith.constant 0 : index
    %0 = vector.load %arg2[%c0, %c0_0] : memref<6x256xf32, #tpu.memory_space<vmem>>, vector<6x256xf32>
    %c0_1 = arith.constant 0 : index
    %c0_2 = arith.constant 0 : index
    %1 = vector.load %arg3[%c0_1, %c0_2] : memref<6x1xf32, #tpu.memory_space<vmem>>, vector<6x1xf32>
    %2 = vector.broadcast %1 : vector<6x1xf32> to vector<6x256xf32>
    %3 = arith.mulf %0, %2 : vector<6x256xf32>
    %c0_3 = arith.constant 0 : index
    %c0_4 = arith.constant 0 : index
    %4 = vector.load %arg4[%c0_3, %c0_4] : memref<6x1xf32, #tpu.memory_space<vmem>>, vector<6x1xf32>
    %5 = vector.broadcast %4 : vector<6x1xf32> to vector<6x256xf32>
    %6 = arith.addf %3, %5 : vector<6x256xf32>
    %c0_5 = arith.constant 0 : index
    %c0_6 = arith.constant 0 : index
    %7 = vector.load %arg5[%c0_5, %c0_6] : memref<6x256xf32, #tpu.memory_space<vmem>>, vector<6x256xf32>
    tpu.vector_store %arg5[%c0_5, %c0_6], %6 {strides = array<i32>} : memref<6x256xf32, #tpu.memory_space<vmem>>, vector<6x256xf32>,
    return
  }
  func.func @transform_0(%arg0: i32, %arg1: i32) -> (i32, i32) {
    %c0_i32 = arith.constant 0 : i32
    return %arg0, %arg1 : i32, i32
  }
  func.func @transform_1(%arg0: i32, %arg1: i32) -> (i32, i32) {
    %c0_i32 = arith.constant 0 : i32
    %c0_i32_0 = arith.constant 0 : i32
    return %arg0, %c0_i32 : i32, i32
  }
  func.func @transform_2(%arg0: i32, %arg1: i32) -> (i32, i32) {
    %c0_i32 = arith.constant 0 : i32
    %c0_i32_0 = arith.constant 0 : i32
    return %arg0, %c0_i32 : i32, i32
  }
  func.func @transform_3(%arg0: i32, %arg1: i32) -> (i32, i32) {
    %c0_i32 = arith.constant 0 : i32
    return %arg0, %arg1 : i32, i32
  }
}

</mosaic_0001>

<bundles_post_ra>
// kernel: tile.1
= control target key start
LH: loop header
LB: loop body
LE: loop exit
PB: predicated region body
PF: predicated region fallthrough
CT: control target
= control target key end

     0   :  { %s26_s8 = smov 126   ;;  %vm7_vm0 = vcmask 7168   ;;  %s49_s0 = inlined_call_operand.vmem [shape: f32[2,3], index: 0, kind: input, shape index: {}]   ;;  %s50_s1 = inlined_call_operand.vmem [shape: f32[6,1], index: 1, kind: output, shape index: {}]  }
   0x1   :  { %v4_v0 = vld [vmem:[%s49_s0] sm:$0x3]  ;;  %s25_s0 = smov 127  }
   0x2   :  { %5 = vst [vmem:[#allocation0] sm:$0x3] %v4_v0 }
   0x9   :  { %v9_v1 = vld [vmem:[#allocation0] sm:$0x3]  }
   0xa   :  { %10 = vrot.lane.b32.xlu0 %v9_v1, %s25_s0  ;;  %v15_v2 = vld [vmem:[#allocation0] sm:$0x3]  }
   0xb   :  { %v6_v3 = vld [vmem:[#allocation0] sm:$0x3]  }
   0xc   :  { %8 = vst.msk [vmem:[%s50_s1] ss:$3 sm:$0x3] %vm7_vm0, %v6_v3  }
  0x12   :  { %16 = vrot.lane.b32.xlu0 %v15_v2, %s26_s8 }
  0x7c   :  { %v11_v4 = vpop.permute.xlu0 %10  }
  0x7d   :  { %21 = vst.msk [vmem:[%s50_s1 + $0x1] ss:$3 sm:$0x3] %vm7_vm0, %v11_v4  }
  0x84   :  { %v17_v5 = vpop.permute.xlu0 %16  }
  0x85   :  { %22 = vst.msk [vmem:[%s50_s1 + $0x2] ss:$3 sm:$0x3] %vm7_vm0, %v17_v5  }

// kernel: tile.13
= control target key start
LH: loop header
LB: loop body
LE: loop exit
PB: predicated region body
PF: predicated region fallthrough
CT: control target
= control target key end

     0   :  { %s22_s0 = inlined_call_operand.vmem [shape: f32[3], index: 0, kind: input, shape index: {}]   ;;  %s23_s1 = inlined_call_operand.vmem [shape: f32[2,3], index: 1, kind: output, shape index: {}]  }
   0x1   :  { %v4_v0 = vld [vmem:[%s22_s0] ss:$0 sm:$0xff] }
   0x2   :  { %5 = vst [vmem:[%s23_s1] sm:$0x3] %v4_v0 }

// kernel: _lambda_.1
= control target key start
LH: loop header
LB: loop body
LE: loop exit
PB: predicated region body
PF: predicated region fallthrough
CT: control target
= control target key end

     0   :  { %v40_v0 = vmov 0   ;;  %s79_s1 = inlined_call_operand.vmem [shape: f32[6,1], index: 1, kind: input, shape index: {}]   ;;  %s80_s2 = inlined_call_operand.vmem [shape: f32[6,1], index: 2, kind: input, shape index: {}]   ;;  %s81_s0 = inlined_call_operand.vmem [shape: f32[6,256], index: 0, kind: input, shape index: {}]   ;;  %s82_s3 = inlined_call_operand.vmem [shape: f32[6,256], index: 3, kind: output, shape index: {}]  }
   0x1   :  { %39 = vset.pattern.permute.xlu0 %v40_v0  ;;  %v16_v1 = vld [vmem:[%s79_s1] sm:$0x3f]  ;;  %v15_v5 = vld [vmem:[%s81_s0 + $0x8] sm:$0x3f] }
   0x2   :  { %19 = vperm.xlu0 %39, %v16_v1   ;;  %v24_v2 = vld [vmem:[%s80_s2] sm:$0x3f] }
   0x3   :  { %v14_v4 = vld [vmem:[%s81_s0] sm:$0x3f] }
   0xa   :  { %27 = vperm.xlu0 %39, %v24_v2  }
  0x74   :  { %v20_v3 = vpop.permute.xlu0 %19 }
  0x75   :  { %v22_v6 = vmul.f32 %v20_v3, %v14_v4  ;;  %v23_v7 = vmul.f32 %v20_v3, %v15_v5 }
  0x7c   :  { %v28_v8 = vpop.permute.xlu0 %27 }
  0x7d   :  { %v30_v9 = vadd.f32 %v28_v8, %v22_v6  ;;  %v31_v10 = vadd.f32 %v28_v8, %v23_v7 }
  0x7f   :  { %32 = vst [vmem:[%s82_s3] sm:$0x3f] %v30_v9 }
  0x80   :  { %33 = vst [vmem:[%s82_s3 + $0x8] sm:$0x3f] %v31_v10 }

</bundles_post_ra>
